<compile_context>
chip_gen: v5e
topology: v5e:2x2
jax: 0.10.0
libtpu: 0.0.40
codegen_flags: <defaults>
</compile_context>

<pallas_src>
import functools

import jax
import jax.numpy as jnp
from jax import lax
from jax.experimental import pallas as pl
from jax.experimental.pallas import tpu as pltpu

LN_EPS = 1e-6  # matches nn.LayerNorm(hidden_size, eps=1e-06)


def embed_ln_kernel(ids_ref, emb_ref, gamma_ref, beta_ref, out_ref):
    """One grid step: T tokens -> one dense (T, H) output block.

    ids_ref   : VMEM (T, 1) int32  -- token ids for this tile
    emb_ref   : VMEM (V, H)        -- full embedding table (resident, constant index)
    gamma_ref : VMEM (1, H)        -- LN scale
    beta_ref  : VMEM (1, H)        -- LN shift
    out_ref   : VMEM (T, H)        -- output tile
    """
    T = out_ref.shape[0]
    V = emb_ref.shape[0]

    # Gather-as-matmul: (T, V) one-hot @ (V, H) table on the MXU (exact: 1.0 * row).
    ids = ids_ref[...]                                        # (T, 1) i32
    vocab = lax.broadcasted_iota(jnp.int32, (T, V), 1)        # (T, V)
    one_hot = (ids == vocab).astype(emb_ref.dtype)            # (T, V)
    x = jnp.dot(one_hot, emb_ref[...],
                preferred_element_type=jnp.float32)           # (T, H) f32

    # LayerNorm: biased variance, eps inside rsqrt -- matches PyTorch nn.LayerNorm.
    mean = jnp.mean(x, axis=-1, keepdims=True)                # XLU reduce
    xc = x - mean
    var = jnp.mean(xc * xc, axis=-1, keepdims=True)
    inv = lax.rsqrt(var + LN_EPS)                             # EUP
    gamma = gamma_ref[...]                                    # loaded once per step
    beta = beta_ref[...]
    out_ref[...] = (xc * inv * gamma + beta).astype(out_ref.dtype)
    # TODO(synk): training-mode dropout would go here (PRNG mask + 1/(1-p) scale).


def _pick_tile_tokens(n_tokens, requested):
    """Largest tile <= requested that is a multiple of 8 (f32 sublane rule),
    or the full token count (a full-extent block is always legal)."""
    t = int(min(requested, n_tokens))
    if t >= n_tokens:
        return int(n_tokens)
    return max(8, (t // 8) * 8)


@functools.partial(jax.jit, static_argnames=("tile_tokens",))
def embeddings_forward(input_ids, emb_table, gamma, beta, *, tile_tokens=256):
    B, S = input_ids.shape
    V, H = emb_table.shape
    N = B * S

    T = _pick_tile_tokens(N, tile_tokens)
    n_tiles = pl.cdiv(N, T)
    N_pad = n_tiles * T

    # Clamp ids like XLA gather does in the reference (no silent OOB behavior).
    ids = jnp.clip(input_ids.reshape(N).astype(jnp.int32), 0, V - 1)
    if N_pad != N:
        # Fallback only: normally T divides B*S so there is no pad / post-slice copy.
        ids = jnp.pad(ids, (0, N_pad - N))
    ids2d = ids.reshape(N_pad, 1)

    gamma2 = gamma.reshape(1, H).astype(jnp.float32)
    beta2 = beta.reshape(1, H).astype(jnp.float32)

    # Explicit VMEM budget: double-buffered table + ids + output tiles + slack,
    # capped below v7x's 64 MiB physical VMEM.
    table_bytes = V * H * emb_table.dtype.itemsize
    out_tile_bytes = T * H * 4
    ids_tile_bytes = T * 4
    vmem_limit = int(min(
        2 * (table_bytes + out_tile_bytes + ids_tile_bytes + 2 * H * 4) + (8 << 20),
        64 << 20,
    ))

    out_flat = pl.pallas_call(
        embed_ln_kernel,
        out_shape=jax.ShapeDtypeStruct((N_pad, H), jnp.float32),
        grid=(n_tiles,),
        in_specs=[
            pl.BlockSpec((T, 1), lambda i: (i, 0)),   # ids tile
            pl.BlockSpec((V, H), lambda i: (0, 0)),   # full table, VMEM-resident
            pl.BlockSpec((1, H), lambda i: (0, 0)),   # gamma
            pl.BlockSpec((1, H), lambda i: (0, 0)),   # beta
        ],
        out_specs=pl.BlockSpec((T, H), lambda i: (i, 0)),
        compiler_params=pltpu.CompilerParams(
            dimension_semantics=("parallel",),        # tokens independent -> v7x 2-TC sharding
            vmem_limit_bytes=vmem_limit,
        ),
    )(ids2d, emb_table, gamma2, beta2)

    if N_pad != N:
        out_flat = out_flat[:N]
    return out_flat.reshape(B, S, H)


def embeddings_reference(input_ids, emb_table, gamma, beta):
    x = emb_table[input_ids]                                   # (B, S, H)
    mean = jnp.mean(x, axis=-1, keepdims=True)
    var = jnp.mean((x - mean) ** 2, axis=-1, keepdims=True)
    return (x - mean) * lax.rsqrt(var + LN_EPS) * gamma + beta


if __name__ == "__main__":
    # config: vocab_size=64, hidden_size=128, hidden_dropout_prob=0.1 (eval -> identity)
    B, S, V, H = 4, 32, 64, 128

    key = jax.random.PRNGKey(0)
    k_ids, k_emb = jax.random.split(key)

    input_ids = jax.random.randint(k_ids, (B, S), 0, V, dtype=jnp.int32)
    emb_table = jax.random.normal(k_emb, (V, H), dtype=jnp.float32)
    gamma = jnp.ones((H,), dtype=jnp.float32)    # nn.LayerNorm default weight
    beta = jnp.zeros((H,), dtype=jnp.float32)    # nn.LayerNorm default bias

    # tile_tokens=64 -> 2 grid steps at these small demo shapes (exercises tiling);
    # at realistic shapes the default 256 applies.
    out = embeddings_forward(input_ids, emb_table, gamma, beta, tile_tokens=64)
    out = jax.block_until_ready(out)

    ref = embeddings_reference(input_ids, emb_table, gamma, beta)
    assert out.shape == (B, S, H)
    assert jnp.allclose(out, ref, atol=1e-4, rtol=1e-4), "mismatch vs reference"

    print("KERNEL_OK")
</pallas_src>

<mosaic_0001>
module attributes {stable_mosaic.version = 11 : i64} {
  func.func @embed_ln_kernel(%arg0: i32, %arg1: memref<64x1xi32, #tpu.memory_space<vmem>>, %arg2: memref<64x128xf32, #tpu.memory_space<vmem>>, %arg3: memref<1x128xf32, #tpu.memory_space<vmem>>, %arg4: memref<1x128xf32, #tpu.memory_space<vmem>>, %arg5: memref<64x128xf32, #tpu.memory_space<vmem>>) attributes {dimension_semantics = [#tpu.dimension_semantics<parallel>], iteration_bounds = array<i64: 2>, scalar_prefetch = 0 : i64, scratch_operands = 0 : i64, tpu.core_type = #tpu.core_type<tc>, window_params = [{transform_indices = @transform_0, window_bounds = array<i64: 64, 1>}, {pipeline_mode = #tpu.pipeline_mode<synchronous>, transform_indices = @transform_1, window_bounds = array<i64: 64, 128>}, {pipeline_mode = #tpu.pipeline_mode<synchronous>, transform_indices = @transform_2, window_bounds = array<i64: 1, 128>}, {pipeline_mode = #tpu.pipeline_mode<synchronous>, transform_indices = @transform_3, window_bounds = array<i64: 1, 128>}, {transform_indices = @transform_4, window_bounds = array<i64: 64, 128>}]} {
    %c0 = arith.constant 0 : index
    %c0_0 = arith.constant 0 : index
    %0 = vector.load %arg1[%c0, %c0_0] : memref<64x1xi32, #tpu.memory_space<vmem>>, vector<64x1xi32>
    %1 = tpu.iota {dimensions = array<i32: 1>} : vector<64x64xi32>
    %2 = vector.broadcast %0 : vector<64x1xi32> to vector<64x64xi32>
    %3 = arith.cmpi eq, %2, %1 : vector<64x64xi32>
    %4 = arith.extui %3 : vector<64x64xi1> to vector<64x64xi32>
    %5 = arith.sitofp %4 : vector<64x64xi32> to vector<64x64xf32>
    %c0_1 = arith.constant 0 : index
    %c0_2 = arith.constant 0 : index
    %6 = vector.load %arg2[%c0_1, %c0_2] : memref<64x128xf32, #tpu.memory_space<vmem>>, vector<64x128xf32>
    %cst = arith.constant dense<0.000000e+00> : vector<64x128xf32>
    %7 = tpu.matmul %5, %6, %cst {dimension_numbers = #tpu.dot_dimension_numbers<[1], [0], [0], [1], [0, 0, 1, 1], [], []>} : vector<64x64xf32>, vector<64x128xf32>, vector<64x128xf32> -> vector<64x128xf32>
    %cst_3 = arith.constant dense<0.000000e+00> : vector<64xf32>
    %8 = vector.multi_reduction <add>, %7, %cst_3 [1] : vector<64x128xf32> to vector<64xf32>
    %9 = vector.shape_cast %8 : vector<64xf32> to vector<64x1xf32>
    %cst_4 = arith.constant 1.280000e+02 : f32
    %10 = vector.broadcast %cst_4 : f32 to vector<64x1xf32>
    %11 = arith.divf %9, %10 : vector<64x1xf32>
    %12 = vector.broadcast %11 : vector<64x1xf32> to vector<64x128xf32>
    %13 = arith.subf %7, %12 : vector<64x128xf32>
    %14 = arith.mulf %13, %13 : vector<64x128xf32>
    %cst_5 = arith.constant dense<0.000000e+00> : vector<64xf32>
    %15 = vector.multi_reduction <add>, %14, %cst_5 [1] : vector<64x128xf32> to vector<64xf32>
    %16 = vector.shape_cast %15 : vector<64xf32> to vector<64x1xf32>
    %cst_6 = arith.constant 1.280000e+02 : f32
    %17 = vector.broadcast %cst_6 : f32 to vector<64x1xf32>
    %18 = arith.divf %16, %17 : vector<64x1xf32>
    %cst_7 = arith.constant 9.99999997E-7 : f32
    %19 = vector.broadcast %cst_7 : f32 to vector<64x1xf32>
    %20 = arith.addf %18, %19 : vector<64x1xf32>
    %21 = math.rsqrt %20 : vector<64x1xf32>
    %c0_8 = arith.constant 0 : index
    %c0_9 = arith.constant 0 : index
    %22 = vector.load %arg3[%c0_8, %c0_9] : memref<1x128xf32, #tpu.memory_space<vmem>>, vector<1x128xf32>
    %c0_10 = arith.constant 0 : index
    %c0_11 = arith.constant 0 : index
    %23 = vector.load %arg4[%c0_10, %c0_11] : memref<1x128xf32, #tpu.memory_space<vmem>>, vector<1x128xf32>
    %24 = vector.broadcast %21 : vector<64x1xf32> to vector<64x128xf32>
    %25 = arith.mulf %13, %24 : vector<64x128xf32>
    %26 = vector.broadcast %22 : vector<1x128xf32> to vector<64x128xf32>
    %27 = arith.mulf %25, %26 : vector<64x128xf32>
    %28 = vector.broadcast %23 : vector<1x128xf32> to vector<64x128xf32>
    %29 = arith.addf %27, %28 : vector<64x128xf32>
    %c0_12 = arith.constant 0 : index
    %c0_13 = arith.constant 0 : index
    %30 = vector.load %arg5[%c0_12, %c0_13] : memref<64x128xf32, #tpu.memory_space<vmem>>, vector<64x128xf32>
    tpu.vector_store %arg5[%c0_12, %c0_13], %29 {strides = array<i32>} : memref<64x128xf32, #tpu.memory_space<vmem>>, vector<64x128xf32>,
    return
  }
  func.func @transform_0(%arg0: i32) -> (i32, i32) {
    %c0_i32 = arith.constant 0 : i32
    %c0_i32_0 = arith.constant 0 : i32
    return %arg0, %c0_i32 : i32, i32
  }
  func.func @transform_1(%arg0: i32) -> (i32, i32) {
    %c0_i32 = arith.constant 0 : i32
    %c0_i32_0 = arith.constant 0 : i32
    %c0_i32_1 = arith.constant 0 : i32
    return %c0_i32, %c0_i32_0 : i32, i32
  }
  func.func @transform_2(%arg0: i32) -> (i32, i32) {
    %c0_i32 = arith.constant 0 : i32
    %c0_i32_0 = arith.constant 0 : i32
    %c0_i32_1 = arith.constant 0 : i32
    return %c0_i32, %c0_i32_0 : i32, i32
  }
  func.func @transform_3(%arg0: i32) -> (i32, i32) {
    %c0_i32 = arith.constant 0 : i32
    %c0_i32_0 = arith.constant 0 : i32
    %c0_i32_1 = arith.constant 0 : i32
    return %c0_i32, %c0_i32_0 : i32, i32
  }
  func.func @transform_4(%arg0: i32) -> (i32, i32) {
    %c0_i32 = arith.constant 0 : i32
    %c0_i32_0 = arith.constant 0 : i32
    return %arg0, %c0_i32 : i32, i32
  }
}

</mosaic_0001>

<bundles_post_ra>
// kernel: embeddings_forward.1
= control target key start
LH: loop header
LB: loop body
LE: loop exit
PB: predicated region body
PF: predicated region fallthrough
CT: control target
= control target key end

     0   :  { %9 = vsyncpa [#allocation3], 0  ;;  %s1074_s0 = inlined_call_operand.vmem [shape: s32[128,1], index: 0, kind: input, shape index: {}]   ;;  %s1075_s1 = inlined_call_operand.vmem [shape: f32[64,128], index: 1, kind: input, shape index: {}]   ;;  %s1076_s2 = inlined_call_operand.vmem [shape: f32[1,128], index: 2, kind: input, shape index: {}]   ;;  %s1077_s3 = inlined_call_operand.vmem [shape: f32[1,128], index: 3, kind: input, shape index: {}]   ;;  %s1078_s4 = inlined_call_operand.hbm [shape: f32[128,128], index: 4, kind: output, shape index: {}]  }
   0x1   :  { %11 = vsyncpa [#allocation3 + $0x1], 0  ;;  %s822_s15 = smov 0   ;;  %s824_s16 = smov 0  }
   0x2   :  { %s826_s17 = smov 0   ;;  %s828_s18 = smov 0  }
   0x3 LB: > { %s843_s19 = sadd.s32 4294967295, %s790_s18   ;;  %s608_s20 = sadd.s32 4294967294, %s790_s18   ;;  %s790_s18 = sphi %s828_s18, %s1084_s18   ;;  %s786_s17 = sphi %s826_s17, %s1083_s17   ;;  %s782_s16 = sphi %s824_s16, %s1082_s16   ;;  %s778_s15 = sphi %s822_s15, %s1081_s15  }
   0x4   : > { %s847_s21 = sadd.s32 1, %s790_s18   ;;  %s113_s22 = sadd.s32 1, %s786_s17 }
   0x5   : > { %s110_s23 = ssub.s32 %s790_s18, %s847_s21  ;;  %p123_p0 = scmp.ne.s32.totalorder %s786_s17, %s782_s16 }
   0x6   : > { %p111_p1 = scmp.eq.s32.totalorder %s110_s23, 0  ;;  %p124_p2 = scmp.eq.s32.totalorder %s843_s19, 1 }
   0x7   : > { %p129_p3 = scmp.ne.s32.totalorder %s782_s16, %s778_s15  ;;  %p130_p4 = scmp.eq.s32.totalorder %s608_s20, 1 }
   0x8   : > { %s858_s24 = scalar_select %p111_p1, %s786_s17, %s113_s22  }
   0x9   : > { %p860_p5 = por %p124_p2, %p123_p0  ;;  %p864_p6 = por %p130_p4, %p129_p3 }
   0xa   : > { %p611_p7 = scmp.ge.s32.totalorder %s790_s18, 1  ;;  %p166_p8 = scmp.lt.s32.totalorder %s790_s18, 3 }
   0xc   : > { %p167_p9 = pnand %p611_p7, %p166_p8 }
   0xd   : > { %s613_s27 = sshll.u32 (!%p167_p9), %s843_s19, 3  ;;  %s189_s5 = sand.u32 (!%p167_p9), 1, %s782_s16  }
   0xe   : > { %170 = sbr.rel (%p167_p9) target bundleno = 566 (0x236), region = 36  ;;  %p193_p10 = scmp.lt.s32.totalorder (!%p167_p9), %s613_s27, 15 }
   0xf   : > { %s612_s10 = sshll.u32 (!%p167_p9), %s189_s5, 6  ;;  %s636_s12 = sshll.u32 (!%p167_p9), %s843_s19, 6 }
  0x10   : > { %s542_s19 = scalar_lea.hbm (!%p167_p9), %s1078_s4, %s636_s12  ;;  %s531_s23 = scalar_lea.sflag (!%p167_p9), [#allocation3], %s189_s5 }
  0x11   : > { %s545_s22 = sshll.u32 (!%p167_p9), %s542_s19, 4  ;;  %s748_s6 = scalar_lea.hbm (!%p167_p9), %s1078_s4, 128  ;;  %s546_s22 = int_to_ptr.hbm [resolvable:$true] %s545_s22 }
  0x13   : > { %v264_v0 = vld [vmem:[%s1075_s1 + $0x38] sm:$0xff]  ;;  %v792_v1 = vmov 0   ;;  %v263_v2 = vld [vmem:[%s1075_s1 + $0x30] sm:$0xff]  ;;  %s1086_s27 = smov (!%p193_p10, %s613_s27), 15  ;;  %v262_v3 = vld [vmem:[%s1075_s1 + $0x28] sm:$0xff]  ;;  %v207_v17 = vlaneseq  ;;  %vm265_vm0 = vcmask 523264  }
  0x14   : > { %706 = vset.pattern.permute.xlu1 %v792_v1  ;;  %705 = vset.pattern.permute.xlu0 %v792_v1  ;;  %s614_s8 = sshll.u32 %s1086_s27, 3  ;;  %v261_v4 = vld [vmem:[%s1075_s1 + $0x20] sm:$0xff]  ;;  %v260_v7 = vld [vmem:[%s1075_s1 + $0x18] sm:$0xff]  ;;  %v259_v9 = vld [vmem:[%s1075_s1 + $0x10] sm:$0xff]  ;;  %v793_v21 = vmov 0.0   ;;  %v794_v44 = vmov 128.0  }
  0x15   : > { %707 = vset.pattern.permute.xlu2 %v792_v1  ;;  %298 = vmatpush.msra.mxu0 %v264_v0  ;;  %s883_s11 = scalar_lea.vmem %s1074_s0, %s614_s8  ;;  %v258_v10 = vld [vmem:[%s1075_s1 + $0x8] sm:$0xff]  ;;  %v257_v16 = vld [vmem:[%s1075_s1] sm:$0xff]  ;;  %v208_v18 = vand.u32 127, %v207_v17  ;;  %710 = vrcp.f32 %v794_v44  ;;  %s742_s27 = sshra.s32 %s546_s22, 4  ;;  %s743_s27 = int_to_ptr.hbm [resolvable:$true] %s742_s27 }
  0x16   : > { %638 = vmatpush.msra.mxu2 %v264_v0  ;;  %637 = vmatpush.msra.mxu1 %v264_v0  ;;  %v203_v5 = vld [vmem:[%s883_s11 + $0x20] sm:$0xff]  ;;  %v204_v8 = vld [vmem:[%s883_s11 + $0x28] sm:$0xff]  ;;  %v205_v11 = vld [vmem:[%s883_s11 + $0x30] sm:$0xff]  ;;  %s744_s28 = scalar_lea.hbm %s743_s27, 64  ;;  %p749_p0 = scmp.lt.s32.totalorder %s743_s27, %s1078_s4 }
  0x17   : > { %299 = vmatpush.msra.mxu0 %v263_v2  ;;  %639 = vmatpush.msra.mxu3 %v264_v0  ;;  %v199_v6 = vld [vmem:[%s883_s11] sm:$0xff]  ;;  %v201_v12 = vld [vmem:[%s883_s11 + $0x10] sm:$0xff]  ;;  %v206_v13 = vld [vmem:[%s883_s11 + $0x38] sm:$0xff]  ;;  %p745_p11 = scmp.ne.s32.totalorder %s743_s27, %s744_s28  ;;  %p750_p1 = scmp.lt.s32.totalorder %s748_s6, %s744_s28 }
  0x18   : > { %641 = vmatpush.msra.mxu2 %v263_v2  ;;  %640 = vmatpush.msra.mxu1 %v263_v2  ;;  %v200_v14 = vld [vmem:[%s883_s11 + $0x8] sm:$0xff]  ;;  %v202_v15 = vld [vmem:[%s883_s11 + $0x18] sm:$0xff]  ;;  %s993_s11 = scalar_lea.vmem [#allocation2], %s612_s10 }
  0x19   : > { %300 = vmatpush.msra.mxu0 %v262_v3  ;;  %642 = vmatpush.msra.mxu3 %v263_v2  ;;  %s543_s20 = sshll.u32 %s993_s11, 4  ;;  %p746_p12 = pnand %p745_p11, %p860_p5  ;;  %s544_s20 = int_to_ptr.vmem [resolvable:$true] %s543_s20 }
  0x1a   : > { %644 = vmatpush.msra.mxu2 %v262_v3  ;;  %643 = vmatpush.msra.mxu1 %v262_v3  ;;  %p751_p2 = por %p750_p1, %p749_p0 }
  0x1b   : > { %222 = vperm.xlu0 %705, %v203_v5   ;;  %210 = vperm.xlu1 %706, %v199_v6   ;;  %v711_v45 = vpop.eup %710  ;;  %p747_p13 = pneg %p746_p12 }
  0x1c   : > { %301 = vmatpush.msra.mxu0 %v261_v4  ;;  %647 = vmatpush.msra.mxu2 %v261_v4  ;;  %v348_v46 = vmul.f32 128.0, %v711_v45  ;;  %vm352_vm9 = vweird.f32 %v711_v45 }
  0x1d   : > { %225 = vperm.xlu2 %707, %v204_v8   ;;  %645 = vmatpush.msra.mxu3 %v262_v3  ;;  %p752_p3 = pnand %p751_p2, %p747_p13 }
  0x1e   : > { %302 = vmatpush.msra.mxu0 %v260_v7  ;;  %650 = vmatpush.msra.mxu2 %v260_v7  ;;  %v349_v47 = vsub.f32 1.0, %v348_v46 }
  0x1f   : > { %646 = vmatpush.msra.mxu1 %v261_v4  ;;  %648 = vmatpush.msra.mxu3 %v261_v4 }
  0x20   : > { %303 = vmatpush.msra.mxu0 %v259_v9  ;;  %653 = vmatpush.msra.mxu2 %v259_v9  ;;  %v350_v48 = vmul.f32 %v711_v45, %v349_v47  ;;  %v978_v47 = vld [vmem:[%s1077_s3] ss:$0 sm:$0xff] }
  0x21   : > { %649 = vmatpush.msra.mxu1 %v260_v7  ;;  %651 = vmatpush.msra.mxu3 %v260_v7 }
  0x22   : > { %304 = vmatpush.msra.mxu0 %v258_v10  ;;  %656 = vmatpush.msra.mxu2 %v258_v10  ;;  %v351_v49 = vadd.f32 %v711_v45, %v350_v48 }
  0x23   : > { %228 = vperm.xlu0 %705, %v205_v11   ;;  %216 = vperm.xlu1 %706, %v201_v12  }
  0x24   : > { %652 = vmatpush.msra.mxu1 %v259_v9  ;;  %654 = vmatpush.msra.mxu3 %v259_v9  ;;  %v916_v50 = vsel %vm352_vm9, %v711_v45, %v351_v49 }
  0x25   : > { %231 = vperm.xlu2 %707, %v206_v13   ;;  %305 = vmatpush.msra.mxu0 %v257_v16 }
  0x26   : > { %655 = vmatpush.msra.mxu1 %v258_v10  ;;  %657 = vmatpush.msra.mxu3 %v258_v10 }
  0x27   : > { %659 = vmatpush.msra.mxu2 %v257_v16 }
  0x28   : > { %658 = vmatpush.msra.mxu1 %v257_v16  ;;  %660 = vmatpush.msra.mxu3 %v257_v16 }
  0x2b   : > { %213 = vperm.xlu0 %705, %v200_v14   ;;  %219 = vperm.xlu1 %706, %v202_v15  }
  0x77   : > { %v226_v24 = vpop.permute.xlu2 %225 }
  0x78   : > { %vm238_vm3 = vcmp.eq.s32.totalorder %v226_v24, %v208_v18 }
  0x79   : > { %v620_v27 = vsel %vm238_vm3, 1.0, %v793_v21 }
  0x7f   : > { %v232_v30 = vpop.permute.xlu2 %231 }
  0x80   : > { %vm240_vm6 = vcmp.eq.s32.totalorder %v232_v30, %v208_v18 }
  0x81   : > { %v622_v35 = vsel %vm240_vm6, 1.0, %v793_v21 }
  0x8d   : > { %v223_v19 = vpop.permute.xlu0 %222  ;;  %v211_v20 = vpop.permute.xlu1 %210 }
  0x8e   : > { %vm237_vm1 = vcmp.eq.s32.totalorder %v223_v19, %v208_v18  ;;  %vm233_vm2 = vcmp.eq.s32.totalorder %v211_v20, %v208_v18 }
  0x8f   : > { %v619_v22 = vsel %vm237_vm1, 1.0, %v793_v21  ;;  %v615_v23 = vsel %vm233_vm2, 1.0, %v793_v21 }
  0x90   : > { %623 = vmatmul.msk.f32.vlgmr.msra.gmra.mxu0 %vm265_vm0, %v615_v23  ;;  %627 = vmatmul.msk.f32.vlgmr.msra.gmra.mxu2 %vm265_vm0, %v619_v22 }
  0x95   : > { %v229_v25 = vpop.permute.xlu0 %228  ;;  %v217_v26 = vpop.permute.xlu1 %216 }
  0x96   : > { %vm239_vm4 = vcmp.eq.s32.totalorder %v229_v25, %v208_v18  ;;  %vm235_vm5 = vcmp.eq.s32.totalorder %v217_v26, %v208_v18 }
  0x97   : > { %v621_v28 = vsel %vm239_vm4, 1.0, %v793_v21  ;;  %v617_v29 = vsel %vm235_vm5, 1.0, %v793_v21 }
  0x98   : > { %625 = vmatmul.msk.f32.vlgmr.msra.gmra.mxu1 %vm265_vm0, %v617_v29  ;;  %629 = vmatmul.msk.f32.vlgmr.msra.gmra.mxu3 %vm265_vm0, %v621_v28 }
  0x99   : > { %628 = vmatmul.msk.f32.gmra.mxu2 %vm265_vm0, %v620_v27 }
  0x9d   : > { %v214_v31 = vpop.permute.xlu0 %213  ;;  %v220_v32 = vpop.permute.xlu1 %219 }
  0x9e   : > { %vm234_vm7 = vcmp.eq.s32.totalorder %v214_v31, %v208_v18  ;;  %vm236_vm8 = vcmp.eq.s32.totalorder %v220_v32, %v208_v18 }
  0x9f   : > { %v616_v33 = vsel %vm234_vm7, 1.0, %v793_v21  ;;  %v618_v34 = vsel %vm236_vm8, 1.0, %v793_v21 }
  0xa0   : > { %624 = vmatmul.msk.f32.gmra.mxu0 %vm265_vm0, %v616_v33  ;;  %626 = vmatmul.msk.f32.gmra.mxu1 %vm265_vm0, %v618_v34 }
  0xa1   : > { %630 = vmatmul.msk.f32.gmra.mxu3 %vm265_vm0, %v622_v35 }
 0x10d   : > { %v307_v36 = vpop.f32.mrf.mxu0 }
 0x10e   : > { %331 = vadd.xlane.f32.xlu2 %v307_v36 }
 0x113   : > { %v319_v37 = vpop.f32.mrf.mxu2 }
 0x115   : > { %v313_v38 = vpop.f32.mrf.mxu1 }
 0x116   : > { %339 = vadd.xlane.f32.xlu2 %v319_v37  ;;  %335 = vadd.xlane.f32.xlu1 %v313_v38 }
 0x11b   : > { %v325_v39 = vpop.f32.mrf.mxu3 }
 0x11c   : > { %v322_v42 = vpop.f32.mrf.mxu2 }
 0x11d   : > { %v310_v40 = vpop.f32.mrf.mxu0  ;;  %v316_v41 = vpop.f32.mrf.mxu1 }
 0x11e   : > { %333 = vadd.xlane.f32.xlu0 %v310_v40  ;;  %343 = vadd.xlane.f32.xlu1 %v325_v39 }
 0x11f   : > { %337 = vadd.xlane.f32.xlu2 %v316_v41 }
 0x124   : > { %v328_v43 = vpop.f32.mrf.mxu3 }
 0x126   : > { %341 = vadd.xlane.f32.xlu0 %v322_v42 }
 0x127   : > { %345 = vadd.xlane.f32.xlu2 %v328_v43 }
 0x181   : > { %v332_v51 = vpop.xlane.xlu2 %331 }
 0x182   : > { %v354_v52 = vmul.f32 %v916_v50, %v332_v51 }
 0x184   : > { %v919_v53 = vsub.f32 %v307_v36, %v354_v52 }
 0x186   : > { %v370_v54 = vmul.f32 %v919_v53, %v919_v53 }
 0x188   : > { %378 = vadd.xlane.f32.xlu0 %v370_v54 }
 0x189   : > { %v340_v55 = vpop.xlane.xlu2 %339  ;;  %v336_v56 = vpop.xlane.xlu1 %335 }
 0x18a   : > { %v358_v57 = vmul.f32 %v916_v50, %v340_v55  ;;  %v356_v58 = vmul.f32 %v916_v50, %v336_v56 }
 0x18c   : > { %v925_v59 = vsub.f32 %v319_v37, %v358_v57  ;;  %v927_v60 = vsub.f32 %v313_v38, %v356_v58 }
 0x18e   : > { %v374_v61 = vmul.f32 %v925_v59, %v925_v59  ;;  %v372_v62 = vmul.f32 %v927_v60, %v927_v60 }
 0x190   : > { %386 = vadd.xlane.f32.xlu1 %v374_v61  ;;  %382 = vadd.xlane.f32.xlu2 %v372_v62 }
 0x191   : > { %v334_v63 = vpop.xlane.xlu0 %333  ;;  %v344_v4 = vpop.xlane.xlu1 %343 }
 0x192   : > { %v355_v0 = vmul.f32 %v916_v50, %v334_v63  ;;  %v338_v1 = vpop.xlane.xlu2 %337  ;;  %v360_v7 = vmul.f32 %v916_v50, %v344_v4 }
 0x193   : > { %v357_v2 = vmul.f32 %v916_v50, %v338_v1 }
 0x194   : > { %v935_v3 = vsub.f32 %v310_v40, %v355_v0  ;;  %v945_v12 = vsub.f32 %v325_v39, %v360_v7 }
 0x195   : > { %v937_v5 = vsub.f32 %v316_v41, %v357_v2 }
 0x196   : > { %v371_v6 = vmul.f32 %v935_v3, %v935_v3  ;;  %v376_v18 = vmul.f32 %v945_v12, %v945_v12 }
 0x197   : > { %v373_v8 = vmul.f32 %v937_v5, %v937_v5 }
 0x198   : > { %380 = vadd.xlane.f32.xlu1 %v371_v6 }
 0x199   : > { %384 = vadd.xlane.f32.xlu0 %v373_v8  ;;  %v342_v9 = vpop.xlane.xlu0 %341 }
 0x19a   : > { %v359_v10 = vmul.f32 %v916_v50, %v342_v9  ;;  %v346_v11 = vpop.xlane.xlu2 %345 }
 0x19b   : > { %v361_v13 = vmul.f32 %v916_v50, %v346_v11 }
 0x19c   : > { %v948_v14 = vsub.f32 %v322_v42, %v359_v10 }
 0x19d   : > { %v950_v15 = vsub.f32 %v328_v43, %v361_v13  ;;  %v971_v43 = vld [vmem:[%s1076_s2] ss:$0 sm:$0xff] }
 0x19e   : > { %v375_v16 = vmul.f32 %v948_v14, %v948_v14 }
 0x19f   : > { %v377_v17 = vmul.f32 %v950_v15, %v950_v15 }
 0x1a0   : > { %388 = vadd.xlane.f32.xlu2 %v375_v16 }
 0x1a1   : > { %392 = vadd.xlane.f32.xlu1 %v377_v17  ;;  %390 = vadd.xlane.f32.xlu0 %v376_v18 }
 0x1fb   : > { %v379_v19 = vpop.xlane.xlu0 %378 }
 0x1fc   : > { %v394_v20 = vmul.f32 %v379_v19, %v916_v50 }
 0x1fe   : > { %v402_v21 = vadd.f32 1e-06, %v394_v20 }
 0x200   : > { %712 = vrsqrt.f32 %v402_v21  ;;  %vm416_vm11 = vweird.f32 %v402_v21 }
 0x203   : > { %v383_v22 = vpop.xlane.xlu2 %382  ;;  %v387_v23 = vpop.xlane.xlu1 %386 }
 0x204   : > { %v396_v24 = vmul.f32 %v383_v22, %v916_v50  ;;  %v398_v25 = vmul.f32 %v387_v23, %v916_v50 }
 0x206   : > { %v713_v26 = vpop.eup %712  ;;  %v404_v27 = vadd.f32 1e-06, %v396_v24  ;;  %v406_v28 = vadd.f32 1e-06, %v398_v25 }
 0x207   : > { %v411_v29 = vmul.f32 %v713_v26, %v402_v21  ;;  %vm417_vm10 = vweird.f32 %v713_v26 }
 0x208   : > { %714 = vrsqrt.f32 %v404_v27  ;;  %vm418_vm12 = vmor %vm416_vm11, %vm417_vm10  ;;  %vm436_vm13 = vweird.f32 %v404_v27  ;;  %vm456_vm1 = vweird.f32 %v406_v28 }
 0x209   : > { %v412_v30 = vmul.f32 %v713_v26, %v411_v29  ;;  %716 = vrsqrt.f32 %v406_v28 }
 0x20b   : > { %v413_v31 = vmul.f32 0.5, %v412_v30  ;;  %v381_v32 = vpop.xlane.xlu1 %380 }
 0x20c   : > { %v385_v33 = vpop.xlane.xlu0 %384  ;;  %v395_v34 = vmul.f32 %v381_v32, %v916_v50 }
 0x20d   : > { %v414_v35 = vsub.f32 1.5, %v413_v31  ;;  %v397_v36 = vmul.f32 %v385_v33, %v916_v50 }
 0x20e   : > { %v715_v37 = vpop.eup %714  ;;  %v963_v38 = vadd.f32 1e-06, %v395_v34 }
 0x20f   : > { %v717_v39 = vpop.eup %716  ;;  %v415_v40 = vmul.f32 %v713_v26, %v414_v35  ;;  %v431_v41 = vmul.f32 %v715_v37, %v404_v27  ;;  %v966_v42 = vadd.f32 1e-06, %v397_v36  ;;  %vm437_vm14 = vweird.f32 %v715_v37 }
 0x210   : > { %v451_v44 = vmul.f32 %v717_v39, %v406_v28  ;;  %718 = vrsqrt.f32 %v963_v38  ;;  %vm457_vm15 = vweird.f32 %v717_v39  ;;  %vm438_vm0 = vmor %vm436_vm13, %vm437_vm14  ;;  %vm426_vm5 = vweird.f32 %v963_v38 }
 0x211   : > { %v419_v45 = vsel %vm418_vm12, %v713_v26, %v415_v40  ;;  %v432_v46 = vmul.f32 %v715_v37, %v431_v41  ;;  %720 = vrsqrt.f32 %v966_v42  ;;  %vm458_vm2 = vmor %vm456_vm1, %vm457_vm15  ;;  %vm446_vm6 = vweird.f32 %v966_v42 }
 0x212   : > { %v492_v48 = vmul.f32 %v419_v45, %v919_v53  ;;  %v452_v49 = vmul.f32 %v717_v39, %v451_v44 }
 0x213   : > { %v433_v51 = vmul.f32 0.5, %v432_v46  ;;  %v389_v52 = vpop.xlane.xlu2 %388 }
 0x214   : > { %v503_v54 = vmul.f32 %v971_v43, %v492_v48  ;;  %v453_v55 = vmul.f32 0.5, %v452_v49  ;;  %v399_v56 = vmul.f32 %v389_v52, %v916_v50  ;;  %v391_v57 = vpop.xlane.xlu0 %390  ;;  %v393_v58 = vpop.xlane.xlu1 %392 }
 0x215   : > { %v434_v61 = vsub.f32 1.5, %v433_v51  ;;  %v400_v62 = vmul.f32 %v391_v57, %v916_v50  ;;  %v401_v8 = vmul.f32 %v393_v58, %v916_v50 }
 0x216   : > { %v719_v63 = vpop.eup %718  ;;  %v514_v0 = vadd.f32 %v978_v47, %v503_v54  ;;  %v454_v1 = vsub.f32 1.5, %v453_v55  ;;  %v987_v53 = vadd.f32 1e-06, %v399_v56 }
 0x217   : > { %v721_v2 = vpop.eup %720  ;;  %v435_v4 = vmul.f32 %v715_v37, %v434_v61  ;;  %v421_v6 = vmul.f32 %v719_v63, %v963_v38  ;;  %v990_v7 = vadd.f32 1e-06, %v400_v62  ;;  %v1003_v20 = vadd.f32 1e-06, %v401_v8 }
 0x218   : > { %522 = vst [vmem:[%s993_s11] sm:$0xff] %v514_v0  ;;  %v455_v9 = vmul.f32 %v717_v39, %v454_v1  ;;  %v441_v10 = vmul.f32 %v721_v2, %v966_v42  ;;  %722 = vrsqrt.f32 %v987_v53  ;;  %vm427_vm3 = vweird.f32 %v719_v63 }
 0x219   : > { %v439_v11 = vsel %vm438_vm0, %v715_v37, %v435_v4  ;;  %v422_v13 = vmul.f32 %v719_v63, %v421_v6  ;;  %724 = vrsqrt.f32 %v990_v7  ;;  %vm447_vm4 = vweird.f32 %v721_v2  ;;  %vm428_vm7 = vmor %vm426_vm5, %vm427_vm3 }
 0x21a   : > { %v494_v50 = vmul.f32 %v439_v11, %v927_v60  ;;  %v459_v16 = vsel %vm458_vm2, %v717_v39, %v455_v9  ;;  %v442_v17 = vmul.f32 %v721_v2, %v441_v10  ;;  %726 = vrsqrt.f32 %v1003_v20  ;;  %vm448_vm8 = vmor %vm446_vm6, %vm447_vm4 }
 0x21b   : > { %v496_v18 = vmul.f32 %v459_v16, %v925_v59  ;;  %v423_v19 = vmul.f32 0.5, %v422_v13  ;;  %vm466_vm11 = vweird.f32 %v987_v53  ;;  %vm476_vm13 = vweird.f32 %v990_v7 }
 0x21c   : > { %v505_v21 = vmul.f32 %v971_v43, %v494_v50  ;;  %v443_v22 = vmul.f32 0.5, %v442_v17  ;;  %vm486_vm0 = vweird.f32 %v1003_v20 }
 0x21d   : > { %v507_v23 = vmul.f32 %v971_v43, %v496_v18  ;;  %v424_v24 = vsub.f32 1.5, %v423_v19 }
 0x21e   : > { %v723_v25 = vpop.eup %722  ;;  %v516_v60 = vadd.f32 %v978_v47, %v505_v21  ;;  %v444_v26 = vsub.f32 1.5, %v443_v22 }
 0x21f   : > { %v725_v59 = vpop.eup %724  ;;  %v518_v27 = vadd.f32 %v978_v47, %v507_v23  ;;  %v425_v28 = vmul.f32 %v719_v63, %v424_v24  ;;  %v461_v29 = vmul.f32 %v723_v25, %v987_v53  ;;  %vm467_vm9 = vweird.f32 %v723_v25 }
 0x220   : > { %524 = vst [vmem:[%s993_s11 + $0x10] sm:$0xff] %v516_v60  ;;  %v445_v30 = vmul.f32 %v721_v2, %v444_v26  ;;  %v471_v31 = vmul.f32 %v725_v59, %v990_v7  ;;  %v727_v37 = vpop.eup %726  ;;  %vm477_vm10 = vweird.f32 %v725_v59  ;;  %vm468_vm12 = vmor %vm466_vm11, %vm467_vm9 }
 0x221   : > { %526 = vst [vmem:[%s993_s11 + $0x20] sm:$0xff] %v518_v27  ;;  %v429_v32 = vsel %vm428_vm7, %v719_v63, %v425_v28  ;;  %v462_v33 = vmul.f32 %v723_v25, %v461_v29  ;;  %v481_v42 = vmul.f32 %v727_v37, %v1003_v20  ;;  %vm478_vm14 = vmor %vm476_vm13, %vm477_vm10  ;;  %vm487_vm15 = vweird.f32 %v727_v37 }
 0x222   : > { %v449_v34 = vsel %vm448_vm8, %v721_v2, %v445_v30  ;;  %v493_v35 = vmul.f32 %v429_v32, %v935_v3  ;;  %v472_v36 = vmul.f32 %v725_v59, %v471_v31  ;;  %vm488_vm1 = vmor %vm486_vm0, %vm487_vm15 }
 0x223   : > { %v495_v38 = vmul.f32 %v449_v34, %v937_v5  ;;  %v463_v39 = vmul.f32 0.5, %v462_v33  ;;  %v482_v48 = vmul.f32 %v727_v37, %v481_v42 }
 0x224   : > { %v504_v40 = vmul.f32 %v971_v43, %v493_v35  ;;  %v473_v41 = vmul.f32 0.5, %v472_v36 }
 0x225   : > { %v506_v44 = vmul.f32 %v971_v43, %v495_v38  ;;  %v464_v45 = vsub.f32 1.5, %v463_v39  ;;  %v483_v52 = vmul.f32 0.5, %v482_v48 }
 0x226   : > { %v515_v46 = vadd.f32 %v978_v47, %v504_v40  ;;  %v474_v3 = vsub.f32 1.5, %v473_v41 }
 0x227   : > { %v517_v49 = vadd.f32 %v978_v47, %v506_v44  ;;  %v465_v5 = vmul.f32 %v723_v25, %v464_v45  ;;  %v484_v57 = vsub.f32 1.5, %v483_v52 }
 0x228   : > { %523 = vst [vmem:[%s993_s11 + $0x8] sm:$0xff] %v515_v46  ;;  %v475_v51 = vmul.f32 %v725_v59, %v474_v3 }
 0x229   : > { %525 = vst [vmem:[%s993_s11 + $0x18] sm:$0xff] %v517_v49  ;;  %v469_v54 = vsel %vm468_vm12, %v723_v25, %v465_v5  ;;  %v485_v62 = vmul.f32 %v727_v37, %v484_v57 }
 0x22a   : > { %v497_v55 = vmul.f32 %v469_v54, %v948_v14  ;;  %v479_v56 = vsel %vm478_vm14, %v725_v59, %v475_v51 }
 0x22b   : > { %v498_v58 = vmul.f32 %v479_v56, %v945_v12  ;;  %v489_v0 = vsel %vm488_vm1, %v727_v37, %v485_v62 }
 0x22c   : > { %v508_v61 = vmul.f32 %v971_v43, %v497_v55  ;;  %v499_v12 = vmul.f32 %v489_v0, %v950_v15 }
 0x22d   : > { %v509_v14 = vmul.f32 %v971_v43, %v498_v58 }
 0x22e   : > { %v519_v63 = vadd.f32 %v978_v47, %v508_v61  ;;  %v510_v53 = vmul.f32 %v971_v43, %v499_v12 }
 0x22f   : > { %v520_v1 = vadd.f32 %v978_v47, %v509_v14 }
 0x230   : > { %527 = vst [vmem:[%s993_s11 + $0x28] sm:$0xff] %v519_v63  ;;  %v521_v2 = vadd.f32 %v978_v47, %v510_v53 }
 0x231   : > { %528 = vst [vmem:[%s993_s11 + $0x30] sm:$0xff] %v520_v1 }
 0x232   : > { %529 = vst [vmem:[%s993_s11 + $0x38] sm:$0xff] %v521_v2 }
 0x233   : > { %755 = shalt.err (!%p752_p3)
}
 0x234   : > { %s795_s5 = smov 128   ;;  %s796_s9 = smov 8  }
 0x235   : > { %661 = dma.vmem_to_hbm [thread:$0]  (%p860_p5), %s544_s20, 1024, %s546_s22, %s531_s23, %s795_s5, %s795_s5, %s796_s9  }
 0x236 PF: > { %p667_p4 = scmp.ge.s32.totalorder %s790_s18, 2  ;;  %s560_s10 = sand.u32 1, %s778_s15  }
 0x237   : > { %s561_s11 = scalar_lea.sflag [#allocation3], %s560_s10 }
 0x238   : > { %p664_p7 = pnand %p667_p4, %p864_p6 }
 0x23a   : > { %p665_p8 = pneg %p664_p7 }
 0x23c   : > { %773 = dma.done.wait (%p665_p8), %s561_s11, 1024  }
 0x23d   : > { %775 = vsyncadd (%p665_p8), %s561_s11, 4294966272  ;;  %p14_p9 = scmp.ge.s32.totalorder %s847_s21, 4   ;;  %s1081_s15 = smov %s782_s16 }
 0x23e   : > { %s1082_s16 = smov %s786_s17  ;;  %s1083_s17 = smov %s858_s24 }
 0x23f   : > { %s1084_s18 = smov %s847_s21  ;;  %16 = sbr.rel (!%p14_p9) target bundleno = 3 (0x3), region = 71 }
 0x244   :  { %567 = vsyncpa [#allocation3], 1 }
 0x245   :  { %569 = vsyncpa [#allocation3 + $0x1], 1 }

</bundles_post_ra>
